<compile_context>
chip_gen: v5e
topology: v5e:2x2
jax: 0.10.0
libtpu: 0.0.40
codegen_flags: <defaults>
</compile_context>

<pallas_src>
import jax
import jax.numpy as jnp
from jax.experimental import pallas as pl
from jax.experimental.pallas import tpu as pltpu


def _round_up(x, m):
    return ((x + m - 1) // m) * m


# ------------------------- parameter packing (wrapper side) -------------------------

def _pack_params(p, H, A):
    """Pack the post-LSTM weight/bias tensors into 2 VMEM slabs with static offsets."""
    # W_hh is already (H, 4H) with gate columns [i | f | g | o] -> used directly.
    whh_pack = p["w_hh"].astype(jnp.float32)

    # fused hidden layer:  [value_hidden | glucose_fc] = relu(h @ Wh + action @ Wa + bias)
    fc_pack = jnp.zeros((H + A + 1, 2 * H), jnp.float32)
    fc_pack = fc_pack.at[0:H, 0:H].set(p["vfc_w"])
    fc_pack = fc_pack.at[0:H, H:2 * H].set(p["gfc_ws"])
    fc_pack = fc_pack.at[H:H + A, H:2 * H].set(p["gfc_wa"])
    fc_pack = fc_pack.at[H + A, 0:H].set(p["vfc_b"].reshape(H))
    fc_pack = fc_pack.at[H + A, H:2 * H].set(p["gfc_b"].reshape(H))

    # block-diagonal output heads: [value | mu_pre | sigma_pre] = hid @ W + bias
    head_pack = jnp.zeros((2 * H + 1, 1 + 2 * A), jnp.float32)
    head_pack = head_pack.at[0:H, 0:1].set(p["vout_w"])
    head_pack = head_pack.at[H:2 * H, 1:1 + A].set(p["mu_w"])
    head_pack = head_pack.at[H:2 * H, 1 + A:1 + 2 * A].set(p["sig_w"])
    head_pack = head_pack.at[2 * H, 0:1].set(p["vout_b"].reshape(1))
    head_pack = head_pack.at[2 * H, 1:1 + A].set(p["mu_b"].reshape(A))
    head_pack = head_pack.at[2 * H, 1 + A:1 + 2 * A].set(p["sig_b"].reshape(A))

    return whh_pack, fc_pack, head_pack


# ------------------------- Pallas kernel -------------------------

def _make_kernel(T, B_pad, H, A):

    def kernel(gx_ref, act_ref, z_ref, whh_ref, fc_ref, head_ref, out_ref):
        whh = whh_ref[...]                                        # (H, 4H), gates [i|f|g|o]

        # sigmoid(x) = 0.5*tanh(0.5 x) + 0.5 on the i/f/o lanes, plain tanh on the g lanes.
        # Per-lane pre-scale / post-scale / offset (constant, hoisted out of the loop).
        lane = jax.lax.broadcasted_iota(jnp.int32, (1, 4 * H), 1)
        is_g = jnp.logical_and(lane >= 2 * H, lane < 3 * H)
        scale = jnp.where(is_g, 1.0, 0.5)                         # pre- and post-scale coincide
        offset = jnp.where(is_g, 0.0, 0.5)

        h = jnp.zeros((B_pad, H), jnp.float32)
        c = jnp.zeros((B_pad, H), jnp.float32)

        # Fully unrolled recurrence: per step only one (B,H)@(H,4H) matmul and one tanh sit
        # on the serial chain; gate extraction is sub-vreg lane selects that overlap.
        # TODO(synk): for large T/B switch to lax.fori_loop over t (gx already lives in a
        #             ref, so liveness is bounded to one step either way).
        for t in range(T):
            pre = gx_ref[t] + jnp.dot(h, whh, preferred_element_type=jnp.float32)  # (B,4H)
            gates = jnp.tanh(pre * scale) * scale + offset        # one EUP push per step
            i_g = gates[:, 0 * H:1 * H]
            f_g = gates[:, 1 * H:2 * H]
            g_g = gates[:, 2 * H:3 * H]
            o_g = gates[:, 3 * H:4 * H]
            c = f_g * c + i_g * g_g
            h = o_g * jnp.tanh(c)

        # ---- fused hidden layers: [value_hidden | glucose_fc] in one (B, 2H) slab ----
        act = act_ref[...]                                        # (B_pad, A)
        hid = jnp.maximum(
            jnp.dot(h, fc_ref[0:H, :], preferred_element_type=jnp.float32)
            + jnp.dot(act, fc_ref[H:H + A, :], preferred_element_type=jnp.float32)
            + fc_ref[H + A:H + A + 1, :],
            0.0)                                                  # (B_pad, 2H)

        # ---- fused block-diagonal heads: [value | mu_pre | sigma_pre] ----
        heads = (jnp.dot(hid, head_ref[0:2 * H, :], preferred_element_type=jnp.float32)
                 + head_ref[2 * H:2 * H + 1, :])                  # (B_pad, 1+2A)

        value = heads[:, 0:1]
        mu = jnp.tanh(heads[:, 1:1 + A])
        sp_in = heads[:, 1 + A:1 + 2 * A] + 1e-5
        sig = jnp.maximum(sp_in, 0.0) + jnp.log(1.0 + jnp.exp(-jnp.abs(sp_in)))  # softplus
        z = z_ref[0]
        cgm = jnp.clip(mu + sig * z, -1.0, 1.0)

        # ---- single lane-packed result: one store, one writeback DMA ----
        out_ref[...] = jnp.concatenate([value, mu, sig, cgm], axis=1)

    return kernel


# ------------------------- wrapper -------------------------

@jax.jit
def critic_forward(s_btf, action, z_scalar, params):
    """s_btf: (B, T, F) batch-first (PyTorch convention); action: (B, A); z: scalar noise."""
    B, T, F = s_btf.shape
    A = action.shape[1]
    H = params["w_hh"].shape[0]
    B_pad = _round_up(B, 8)

    s = s_btf.astype(jnp.float32)
    # Hoisted LSTM input projection (off the recurrent serial path): done as a plain XLA
    # matmul so the lane-sparse (T*B, F) input and the K=F contraction never enter the
    # kernel; the kernel only sees the dense time-major (T, B_pad, 4H) slab.
    gx = jnp.einsum("btf,fg->btg", s, params["w_ih"]) + params["b_lstm"].reshape(1, 1, -1)
    gx = jnp.transpose(gx, (1, 0, 2))                              # (T, B, 4H) time-major
    gx = jnp.pad(gx, ((0, 0), (0, B_pad - B), (0, 0)))             # sublane-aligned batch

    act = jnp.pad(action.astype(jnp.float32), ((0, B_pad - B), (0, 0)))
    z = jnp.reshape(z_scalar.astype(jnp.float32), (1,))
    whh_pack, fc_pack, head_pack = _pack_params(params, H, A)

    vmem = pl.BlockSpec(memory_space=pltpu.MemorySpace.VMEM)
    smem = pl.BlockSpec(memory_space=pltpu.MemorySpace.SMEM)

    flops = (2 * T * B_pad * H * 4 * H                       # recurrent W_hh matmuls
             + 2 * B_pad * (H + A) * 2 * H                   # fused hidden layer
             + 2 * B_pad * 2 * H * (1 + 2 * A))              # fused heads
    transcendentals = T * B_pad * 5 * H + B_pad * 2 * A
    bytes_accessed = 4 * (T * B_pad * 4 * H + B_pad * A + H * 4 * H
                          + (H + A + 1) * 2 * H + (2 * H + 1) * (1 + 2 * A)
                          + B_pad * (1 + 3 * A))

    out = pl.pallas_call(
        _make_kernel(T, B_pad, H, A),
        out_shape=jax.ShapeDtypeStruct((B_pad, 1 + 3 * A), jnp.float32),
        in_specs=[vmem, vmem, smem, vmem, vmem, vmem],
        out_specs=vmem,
        cost_estimate=pl.CostEstimate(flops=flops,
                                      transcendentals=transcendentals,
                                      bytes_accessed=bytes_accessed),
    )(gx, act, z, whh_pack, fc_pack, head_pack)
    # TODO(synk): at production batch sizes add a grid over B_pad-row tiles with
    #             dimension_semantics=("parallel",) (uses v7x's 2nd TensorCore), constant
    #             index_maps for the weight slabs, and size the B tile for v7x's 64 MiB
    #             VMEM (raise vmem_limit_bytes via pltpu.CompilerParams if needed).

    value = out[:B, 0:1]
    cgm_mu = out[:B, 1:1 + A]
    cgm_sigma = out[:B, 1 + A:1 + 2 * A]
    cgm = out[:B, 1 + 2 * A:1 + 3 * A]
    return value, cgm_mu, cgm_sigma, cgm


# ------------------------- deterministic parameter init -------------------------

def _uniform(key, shape, bound):
    return jax.random.uniform(key, shape, jnp.float32, -bound, bound)


def init_params(key, n_features, n_hidden, n_action):
    H, F, A = n_hidden, n_features, n_action
    feat = H            # n_hidden * n_layers * directions (1 layer, unidirectional)
    last_hidden = feat
    ks = jax.random.split(key, 16)
    kb = 1.0 / jnp.sqrt(H)

    # LSTM (PyTorch layout (4H, F)/(4H, H), stored transposed), gate order i,f,g,o
    w_ih = _uniform(ks[0], (4 * H, F), kb).T                      # (F, 4H)
    w_hh = _uniform(ks[1], (4 * H, H), kb).T                      # (H, 4H)
    b_lstm = (_uniform(ks[2], (4 * H,), kb)
              + _uniform(ks[3], (4 * H,), kb)).reshape(1, 4 * H)  # (1, 4H)

    def linear(kw, kbk, fan_in, fan_out, scale=None):
        bound = 1.0 / jnp.sqrt(fan_in)
        w = _uniform(kw, (fan_out, fan_in), bound)                # PyTorch (out, in)
        if scale is not None:                                     # NormedLinear init
            w = w * (scale / jnp.linalg.norm(w, axis=1, keepdims=True))
        b = _uniform(kbk, (fan_out,), bound)
        return w.T, b.reshape(1, fan_out)                         # (in, out), (1, out)

    # ValueModule: Linear(feat, last_hidden) -> NormedLinear(last_hidden, 1, scale=0.1)
    vfc_w, vfc_b = linear(ks[4], ks[5], feat, last_hidden)
    vout_w, vout_b = linear(ks[6], ks[7], last_hidden, 1, scale=0.1)

    # GlucoseModel: Linear(feat + A, last_hidden); two NormedLinear(last_hidden, A, 0.1)
    gfc_w, gfc_b = linear(ks[8], ks[9], feat + A, last_hidden)
    gfc_ws, gfc_wa = gfc_w[:feat, :], gfc_w[feat:, :]             # split state/action rows
    mu_w, mu_b = linear(ks[10], ks[11], last_hidden, A, scale=0.1)
    sig_w, sig_b = linear(ks[12], ks[13], last_hidden, A, scale=0.1)

    return dict(w_ih=w_ih, w_hh=w_hh, b_lstm=b_lstm,
                vfc_w=vfc_w, vfc_b=vfc_b, vout_w=vout_w, vout_b=vout_b,
                gfc_ws=gfc_ws, gfc_wa=gfc_wa, gfc_b=gfc_b,
                mu_w=mu_w, mu_b=mu_b, sig_w=sig_w, sig_b=sig_b)


# ------------------------- pure-JAX reference (for verification) -------------------------

def reference_forward(s_btf, action, z, p):
    B, T, F = s_btf.shape
    H = p["w_hh"].shape[0]
    h = jnp.zeros((B, H), jnp.float32)
    c = jnp.zeros((B, H), jnp.float32)
    for t in range(T):
        g = s_btf[:, t, :] @ p["w_ih"] + h @ p["w_hh"] + p["b_lstm"]
        i, f, gg, o = (jax.nn.sigmoid(g[:, :H]), jax.nn.sigmoid(g[:, H:2 * H]),
                       jnp.tanh(g[:, 2 * H:3 * H]), jax.nn.sigmoid(g[:, 3 * H:]))
        c = f * c + i * gg
        h = o * jnp.tanh(c)
    v = jnp.maximum(h @ p["vfc_w"] + p["vfc_b"], 0.0) @ p["vout_w"] + p["vout_b"]
    fc = jnp.maximum(h @ p["gfc_ws"] + action @ p["gfc_wa"] + p["gfc_b"], 0.0)
    mu = jnp.tanh(fc @ p["mu_w"] + p["mu_b"])
    sig = jax.nn.softplus(fc @ p["sig_w"] + p["sig_b"] + 1e-5)
    cgm = jnp.clip(mu + sig * z, -1.0, 1.0)
    return v, mu, sig, cgm


# ------------------------- main -------------------------

if __name__ == "__main__":
    B, T, F, H, A = 4, 8, 2, 16, 1   # batch, seq, n_features, n_rnn_hidden, n_action

    key = jax.random.PRNGKey(0)
    k_s, k_a, k_z, k_p = jax.random.split(key, 4)

    s = jax.random.normal(k_s, (B, T, F), jnp.float32)      # PyTorch batch_first input
    action = jax.random.normal(k_a, (B, A), jnp.float32)
    z = jax.random.normal(k_z, ())                           # Normal(0,1) scalar sample
    params = init_params(k_p, F, H, A)

    value, cgm_mu, cgm_sigma, cgm = jax.block_until_ready(
        critic_forward(s, action, z, params))

    v_r, mu_r, sig_r, cgm_r = reference_forward(s, action, z, params)
    for got, ref in ((value, v_r), (cgm_mu, mu_r), (cgm_sigma, sig_r), (cgm, cgm_r)):
        assert jnp.allclose(got, ref, rtol=1e-4, atol=1e-5), (got, ref)

    print("KERNEL_OK")
</pallas_src>

<mosaic_0001>
module attributes {stable_mosaic.version = 11 : i64} {
  func.func @kernel(%arg0: memref<8x8x64xf32, #tpu.memory_space<vmem>>, %arg1: memref<8x1xf32, #tpu.memory_space<vmem>>, %arg2: memref<1xf32, #tpu.memory_space<smem>>, %arg3: memref<16x64xf32, #tpu.memory_space<vmem>>, %arg4: memref<18x32xf32, #tpu.memory_space<vmem>>, %arg5: memref<33x3xf32, #tpu.memory_space<vmem>>, %arg6: memref<8x4xf32, #tpu.memory_space<vmem>>) attributes {dimension_semantics = [], scalar_prefetch = 0 : i64, scratch_operands = 0 : i64, tpu.core_type = #tpu.core_type<tc>} {
    %c0 = arith.constant 0 : index
    %c0_0 = arith.constant 0 : index
    %0 = vector.load %arg3[%c0, %c0_0] : memref<16x64xf32, #tpu.memory_space<vmem>>, vector<16x64xf32>
    %1 = tpu.iota {dimensions = array<i32: 1>} : vector<1x64xi32>
    %c32_i32 = arith.constant 32 : i32
    %2 = vector.broadcast %c32_i32 : i32 to vector<1x64xi32>
    %3 = arith.cmpi sge, %1, %2 : vector<1x64xi32>
    %c48_i32 = arith.constant 48 : i32
    %4 = vector.broadcast %c48_i32 : i32 to vector<1x64xi32>
    %5 = arith.cmpi slt, %1, %4 : vector<1x64xi32>
    %6 = arith.andi %3, %5 : vector<1x64xi1>
    %cst = arith.constant 1.000000e+00 : f32
    %cst_1 = arith.constant 5.000000e-01 : f32
    %7 = vector.broadcast %cst : f32 to vector<1x64xf32>
    %8 = vector.broadcast %cst_1 : f32 to vector<1x64xf32>
    %9 = arith.select %6, %7, %8 : vector<1x64xi1>, vector<1x64xf32>
    %cst_2 = arith.constant 0.000000e+00 : f32
    %cst_3 = arith.constant 5.000000e-01 : f32
    %10 = vector.broadcast %cst_2 : f32 to vector<1x64xf32>
    %11 = vector.broadcast %cst_3 : f32 to vector<1x64xf32>
    %12 = arith.select %6, %10, %11 : vector<1x64xi1>, vector<1x64xf32>
    %cst_4 = arith.constant 0.000000e+00 : f32
    %13 = vector.broadcast %cst_4 : f32 to vector<8x16xf32>
    %cst_5 = arith.constant 0.000000e+00 : f32
    %14 = vector.broadcast %cst_5 : f32 to vector<8x16xf32>
    %c0_6 = arith.constant 0 : index
    %c0_7 = arith.constant 0 : index
    %c0_8 = arith.constant 0 : index
    %15 = vector.load %arg0[%c0_6, %c0_7, %c0_8] : memref<8x8x64xf32, #tpu.memory_space<vmem>>, vector<1x8x64xf32>
    %16 = vector.shape_cast %15 : vector<1x8x64xf32> to vector<8x64xf32>
    %cst_9 = arith.constant dense<0.000000e+00> : vector<8x64xf32>
    %17 = tpu.matmul %13, %0, %cst_9 {dimension_numbers = #tpu.dot_dimension_numbers<[1], [0], [0], [1], [0, 0, 1, 1], [], []>} : vector<8x16xf32>, vector<16x64xf32>, vector<8x64xf32> -> vector<8x64xf32>
    %18 = arith.addf %16, %17 : vector<8x64xf32>
    %19 = vector.broadcast %9 : vector<1x64xf32> to vector<8x64xf32>
    %20 = arith.mulf %18, %19 : vector<8x64xf32>
    %21 = math.tanh %20 : vector<8x64xf32>
    %22 = vector.broadcast %9 : vector<1x64xf32> to vector<8x64xf32>
    %23 = arith.mulf %21, %22 : vector<8x64xf32>
    %24 = vector.broadcast %12 : vector<1x64xf32> to vector<8x64xf32>
    %25 = arith.addf %23, %24 : vector<8x64xf32>
    %26 = vector.extract_strided_slice %25 {offsets = [0, 0], sizes = [8, 16], strides = [1, 1]} : vector<8x64xf32> to vector<8x16xf32>
    %27 = vector.extract_strided_slice %25 {offsets = [0, 16], sizes = [8, 16], strides = [1, 1]} : vector<8x64xf32> to vector<8x16xf32>
    %28 = vector.extract_strided_slice %25 {offsets = [0, 32], sizes = [8, 16], strides = [1, 1]} : vector<8x64xf32> to vector<8x16xf32>
    %29 = vector.extract_strided_slice %25 {offsets = [0, 48], sizes = [8, 16], strides = [1, 1]} : vector<8x64xf32> to vector<8x16xf32>
    %30 = arith.mulf %27, %14 : vector<8x16xf32>
    %31 = arith.mulf %26, %28 : vector<8x16xf32>
    %32 = arith.addf %30, %31 : vector<8x16xf32>
    %33 = math.tanh %32 : vector<8x16xf32>
    %34 = arith.mulf %29, %33 : vector<8x16xf32>
    %c1 = arith.constant 1 : index
    %c0_10 = arith.constant 0 : index
    %c0_11 = arith.constant 0 : index
    %35 = vector.load %arg0[%c1, %c0_10, %c0_11] : memref<8x8x64xf32, #tpu.memory_space<vmem>>, vector<1x8x64xf32>
    %36 = vector.shape_cast %35 : vector<1x8x64xf32> to vector<8x64xf32>
    %cst_12 = arith.constant dense<0.000000e+00> : vector<8x64xf32>
    %37 = tpu.matmul %34, %0, %cst_12 {dimension_numbers = #tpu.dot_dimension_numbers<[1], [0], [0], [1], [0, 0, 1, 1], [], []>} : vector<8x16xf32>, vector<16x64xf32>, vector<8x64xf32> -> vector<8x64xf32>
    %38 = arith.addf %36, %37 : vector<8x64xf32>
    %39 = vector.broadcast %9 : vector<1x64xf32> to vector<8x64xf32>
    %40 = arith.mulf %38, %39 : vector<8x64xf32>
    %41 = math.tanh %40 : vector<8x64xf32>
    %42 = vector.broadcast %9 : vector<1x64xf32> to vector<8x64xf32>
    %43 = arith.mulf %41, %42 : vector<8x64xf32>
    %44 = vector.broadcast %12 : vector<1x64xf32> to vector<8x64xf32>
    %45 = arith.addf %43, %44 : vector<8x64xf32>
    %46 = vector.extract_strided_slice %45 {offsets = [0, 0], sizes = [8, 16], strides = [1, 1]} : vector<8x64xf32> to vector<8x16xf32>
    %47 = vector.extract_strided_slice %45 {offsets = [0, 16], sizes = [8, 16], strides = [1, 1]} : vector<8x64xf32> to vector<8x16xf32>
    %48 = vector.extract_strided_slice %45 {offsets = [0, 32], sizes = [8, 16], strides = [1, 1]} : vector<8x64xf32> to vector<8x16xf32>
    %49 = vector.extract_strided_slice %45 {offsets = [0, 48], sizes = [8, 16], strides = [1, 1]} : vector<8x64xf32> to vector<8x16xf32>
    %50 = arith.mulf %47, %32 : vector<8x16xf32>
    %51 = arith.mulf %46, %48 : vector<8x16xf32>
    %52 = arith.addf %50, %51 : vector<8x16xf32>
    %53 = math.tanh %52 : vector<8x16xf32>
    %54 = arith.mulf %49, %53 : vector<8x16xf32>
    %c2 = arith.constant 2 : index
    %c0_13 = arith.constant 0 : index
    %c0_14 = arith.constant 0 : index
    %55 = vector.load %arg0[%c2, %c0_13, %c0_14] : memref<8x8x64xf32, #tpu.memory_space<vmem>>, vector<1x8x64xf32>
    %56 = vector.shape_cast %55 : vector<1x8x64xf32> to vector<8x64xf32>
    %cst_15 = arith.constant dense<0.000000e+00> : vector<8x64xf32>
    %57 = tpu.matmul %54, %0, %cst_15 {dimension_numbers = #tpu.dot_dimension_numbers<[1], [0], [0], [1], [0, 0, 1, 1], [], []>} : vector<8x16xf32>, vector<16x64xf32>, vector<8x64xf32> -> vector<8x64xf32>
    %58 = arith.addf %56, %57 : vector<8x64xf32>
    %59 = vector.broadcast %9 : vector<1x64xf32> to vector<8x64xf32>
    %60 = arith.mulf %58, %59 : vector<8x64xf32>
    %61 = math.tanh %60 : vector<8x64xf32>
    %62 = vector.broadcast %9 : vector<1x64xf32> to vector<8x64xf32>
    %63 = arith.mulf %61, %62 : vector<8x64xf32>
    %64 = vector.broadcast %12 : vector<1x64xf32> to vector<8x64xf32>
    %65 = arith.addf %63, %64 : vector<8x64xf32>
    %66 = vector.extract_strided_slice %65 {offsets = [0, 0], sizes = [8, 16], strides = [1, 1]} : vector<8x64xf32> to vector<8x16xf32>
    %67 = vector.extract_strided_slice %65 {offsets = [0, 16], sizes = [8, 16], strides = [1, 1]} : vector<8x64xf32> to vector<8x16xf32>
    %68 = vector.extract_strided_slice %65 {offsets = [0, 32], sizes = [8, 16], strides = [1, 1]} : vector<8x64xf32> to vector<8x16xf32>
    %69 = vector.extract_strided_slice %65 {offsets = [0, 48], sizes = [8, 16], strides = [1, 1]} : vector<8x64xf32> to vector<8x16xf32>
    %70 = arith.mulf %67, %52 : vector<8x16xf32>
    %71 = arith.mulf %66, %68 : vector<8x16xf32>
    %72 = arith.addf %70, %71 : vector<8x16xf32>
    %73 = math.tanh %72 : vector<8x16xf32>
    %74 = arith.mulf %69, %73 : vector<8x16xf32>
    %c3 = arith.constant 3 : index
    %c0_16 = arith.constant 0 : index
    %c0_17 = arith.constant 0 : index
    %75 = vector.load %arg0[%c3, %c0_16, %c0_17] : memref<8x8x64xf32, #tpu.memory_space<vmem>>, vector<1x8x64xf32>
    %76 = vector.shape_cast %75 : vector<1x8x64xf32> to vector<8x64xf32>
    %cst_18 = arith.constant dense<0.000000e+00> : vector<8x64xf32>
    %77 = tpu.matmul %74, %0, %cst_18 {dimension_numbers = #tpu.dot_dimension_numbers<[1], [0], [0], [1], [0, 0, 1, 1], [], []>} : vector<8x16xf32>, vector<16x64xf32>, vector<8x64xf32> -> vector<8x64xf32>
    %78 = arith.addf %76, %77 : vector<8x64xf32>
    %79 = vector.broadcast %9 : vector<1x64xf32> to vector<8x64xf32>
    %80 = arith.mulf %78, %79 : vector<8x64xf32>
    %81 = math.tanh %80 : vector<8x64xf32>
    %82 = vector.broadcast %9 : vector<1x64xf32> to vector<8x64xf32>
    %83 = arith.mulf %81, %82 : vector<8x64xf32>
    %84 = vector.broadcast %12 : vector<1x64xf32> to vector<8x64xf32>
    %85 = arith.addf %83, %84 : vector<8x64xf32>
    %86 = vector.extract_strided_slice %85 {offsets = [0, 0], sizes = [8, 16], strides = [1, 1]} : vector<8x64xf32> to vector<8x16xf32>
    %87 = vector.extract_strided_slice %85 {offsets = [0, 16], sizes = [8, 16], strides = [1, 1]} : vector<8x64xf32> to vector<8x16xf32>
    %88 = vector.extract_strided_slice %85 {offsets = [0, 32], sizes = [8, 16], strides = [1, 1]} : vector<8x64xf32> to vector<8x16xf32>
    %89 = vector.extract_strided_slice %85 {offsets = [0, 48], sizes = [8, 16], strides = [1, 1]} : vector<8x64xf32> to vector<8x16xf32>
    %90 = arith.mulf %87, %72 : vector<8x16xf32>
    %91 = arith.mulf %86, %88 : vector<8x16xf32>
    %92 = arith.addf %90, %91 : vector<8x16xf32>
    %93 = math.tanh %92 : vector<8x16xf32>
    %94 = arith.mulf %89, %93 : vector<8x16xf32>
    %c4 = arith.constant 4 : index
    %c0_19 = arith.constant 0 : index
    %c0_20 = arith.constant 0 : index
    %95 = vector.load %arg0[%c4, %c0_19, %c0_20] : memref<8x8x64xf32, #tpu.memory_space<vmem>>, vector<1x8x64xf32>
    %96 = vector.shape_cast %95 : vector<1x8x64xf32> to vector<8x64xf32>
    %cst_21 = arith.constant dense<0.000000e+00> : vector<8x64xf32>
    %97 = tpu.matmul %94, %0, %cst_21 {dimension_numbers = #tpu.dot_dimension_numbers<[1], [0], [0], [1], [0, 0, 1, 1], [], []>} : vector<8x16xf32>, vector<16x64xf32>, vector<8x64xf32> -> vector<8x64xf32>
    %98 = arith.addf %96, %97 : vector<8x64xf32>
    %99 = vector.broadcast %9 : vector<1x64xf32> to vector<8x64xf32>
    %100 = arith.mulf %98, %99 : vector<8x64xf32>
    %101 = math.tanh %100 : vector<8x64xf32>
    %102 = vector.broadcast %9 : vector<1x64xf32> to vector<8x64xf32>
    %103 = arith.mulf %101, %102 : vector<8x64xf32>
    %104 = vector.broadcast %12 : vector<1x64xf32> to vector<8x64xf32>
    %105 = arith.addf %103, %104 : vector<8x64xf32>
    %106 = vector.extract_strided_slice %105 {offsets = [0, 0], sizes = [8, 16], strides = [1, 1]} : vector<8x64xf32> to vector<8x16xf32>
    %107 = vector.extract_strided_slice %105 {offsets = [0, 16], sizes = [8, 16], strides = [1, 1]} : vector<8x64xf32> to vector<8x16xf32>
    %108 = vector.extract_strided_slice %105 {offsets = [0, 32], sizes = [8, 16], strides = [1, 1]} : vector<8x64xf32> to vector<8x16xf32>
    %109 = vector.extract_strided_slice %105 {offsets = [0, 48], sizes = [8, 16], strides = [1, 1]} : vector<8x64xf32> to vector<8x16xf32>
    %110 = arith.mulf %107, %92 : vector<8x16xf32>
    %111 = arith.mulf %106, %108 : vector<8x16xf32>
    %112 = arith.addf %110, %111 : vector<8x16xf32>
    %113 = math.tanh %112 : vector<8x16xf32>
    %114 = arith.mulf %109, %113 : vector<8x16xf32>
    %c5 = arith.constant 5 : index
    %c0_22 = arith.constant 0 : index
    %c0_23 = arith.constant 0 : index
    %115 = vector.load %arg0[%c5, %c0_22, %c0_23] : memref<8x8x64xf32, #tpu.memory_space<vmem>>, vector<1x8x64xf32>
    %116 = vector.shape_cast %115 : vector<1x8x64xf32> to vector<8x64xf32>
    %cst_24 = arith.constant dense<0.000000e+00> : vector<8x64xf32>
    %117 = tpu.matmul %114, %0, %cst_24 {dimension_numbers = #tpu.dot_dimension_numbers<[1], [0], [0], [1], [0, 0, 1, 1], [], []>} : vector<8x16xf32>, vector<16x64xf32>, vector<8x64xf32> -> vector<8x64xf32>
    %118 = arith.addf %116, %117 : vector<8x64xf32>
    %119 = vector.broadcast %9 : vector<1x64xf32> to vector<8x64xf32>
    %120 = arith.mulf %118, %119 : vector<8x64xf32>
    %121 = math.tanh %120 : vector<8x64xf32>
    %122 = vector.broadcast %9 : vector<1x64xf32> to vector<8x64xf32>
    %123 = arith.mulf %121, %122 : vector<8x64xf32>
    %124 = vector.broadcast %12 : vector<1x64xf32> to vector<8x64xf32>
    %125 = arith.addf %123, %124 : vector<8x64xf32>
    %126 = vector.extract_strided_slice %125 {offsets = [0, 0], sizes = [8, 16], strides = [1, 1]} : vector<8x64xf32> to vector<8x16xf32>
    %127 = vector.extract_strided_slice %125 {offsets = [0, 16], sizes = [8, 16], strides = [1, 1]} : vector<8x64xf32> to vector<8x16xf32>
    %128 = vector.extract_strided_slice %125 {offsets = [0, 32], sizes = [8, 16], strides = [1, 1]} : vector<8x64xf32> to vector<8x16xf32>
    %129 = vector.extract_strided_slice %125 {offsets = [0, 48], sizes = [8, 16], strides = [1, 1]} : vector<8x64xf32> to vector<8x16xf32>
    %130 = arith.mulf %127, %112 : vector<8x16xf32>
    %131 = arith.mulf %126, %128 : vector<8x16xf32>
    %132 = arith.addf %130, %131 : vector<8x16xf32>
    %133 = math.tanh %132 : vector<8x16xf32>
    %134 = arith.mulf %129, %133 : vector<8x16xf32>
    %c6 = arith.constant 6 : index
    %c0_25 = arith.constant 0 : index
    %c0_26 = arith.constant 0 : index
    %135 = vector.load %arg0[%c6, %c0_25, %c0_26] : memref<8x8x64xf32, #tpu.memory_space<vmem>>, vector<1x8x64xf32>
    %136 = vector.shape_cast %135 : vector<1x8x64xf32> to vector<8x64xf32>
    %cst_27 = arith.constant dense<0.000000e+00> : vector<8x64xf32>
    %137 = tpu.matmul %134, %0, %cst_27 {dimension_numbers = #tpu.dot_dimension_numbers<[1], [0], [0], [1], [0, 0, 1, 1], [], []>} : vector<8x16xf32>, vector<16x64xf32>, vector<8x64xf32> -> vector<8x64xf32>
    %138 = arith.addf %136, %137 : vector<8x64xf32>
    %139 = vector.broadcast %9 : vector<1x64xf32> to vector<8x64xf32>
    %140 = arith.mulf %138, %139 : vector<8x64xf32>
    %141 = math.tanh %140 : vector<8x64xf32>
    %142 = vector.broadcast %9 : vector<1x64xf32> to vector<8x64xf32>
    %143 = arith.mulf %141, %142 : vector<8x64xf32>
    %144 = vector.broadcast %12 : vector<1x64xf32> to vector<8x64xf32>
    %145 = arith.addf %143, %144 : vector<8x64xf32>
    %146 = vector.extract_strided_slice %145 {offsets = [0, 0], sizes = [8, 16], strides = [1, 1]} : vector<8x64xf32> to vector<8x16xf32>
    %147 = vector.extract_strided_slice %145 {offsets = [0, 16], sizes = [8, 16], strides = [1, 1]} : vector<8x64xf32> to vector<8x16xf32>
    %148 = vector.extract_strided_slice %145 {offsets = [0, 32], sizes = [8, 16], strides = [1, 1]} : vector<8x64xf32> to vector<8x16xf32>
    %149 = vector.extract_strided_slice %145 {offsets = [0, 48], sizes = [8, 16], strides = [1, 1]} : vector<8x64xf32> to vector<8x16xf32>
    %150 = arith.mulf %147, %132 : vector<8x16xf32>
    %151 = arith.mulf %146, %148 : vector<8x16xf32>
    %152 = arith.addf %150, %151 : vector<8x16xf32>
    %153 = math.tanh %152 : vector<8x16xf32>
    %154 = arith.mulf %149, %153 : vector<8x16xf32>
    %c7 = arith.constant 7 : index
    %c0_28 = arith.constant 0 : index
    %c0_29 = arith.constant 0 : index
    %155 = vector.load %arg0[%c7, %c0_28, %c0_29] : memref<8x8x64xf32, #tpu.memory_space<vmem>>, vector<1x8x64xf32>
    %156 = vector.shape_cast %155 : vector<1x8x64xf32> to vector<8x64xf32>
    %cst_30 = arith.constant dense<0.000000e+00> : vector<8x64xf32>
    %157 = tpu.matmul %154, %0, %cst_30 {dimension_numbers = #tpu.dot_dimension_numbers<[1], [0], [0], [1], [0, 0, 1, 1], [], []>} : vector<8x16xf32>, vector<16x64xf32>, vector<8x64xf32> -> vector<8x64xf32>
    %158 = arith.addf %156, %157 : vector<8x64xf32>
    %159 = vector.broadcast %9 : vector<1x64xf32> to vector<8x64xf32>
    %160 = arith.mulf %158, %159 : vector<8x64xf32>
    %161 = math.tanh %160 : vector<8x64xf32>
    %162 = vector.broadcast %9 : vector<1x64xf32> to vector<8x64xf32>
    %163 = arith.mulf %161, %162 : vector<8x64xf32>
    %164 = vector.broadcast %12 : vector<1x64xf32> to vector<8x64xf32>
    %165 = arith.addf %163, %164 : vector<8x64xf32>
    %166 = vector.extract_strided_slice %165 {offsets = [0, 0], sizes = [8, 16], strides = [1, 1]} : vector<8x64xf32> to vector<8x16xf32>
    %167 = vector.extract_strided_slice %165 {offsets = [0, 16], sizes = [8, 16], strides = [1, 1]} : vector<8x64xf32> to vector<8x16xf32>
    %168 = vector.extract_strided_slice %165 {offsets = [0, 32], sizes = [8, 16], strides = [1, 1]} : vector<8x64xf32> to vector<8x16xf32>
    %169 = vector.extract_strided_slice %165 {offsets = [0, 48], sizes = [8, 16], strides = [1, 1]} : vector<8x64xf32> to vector<8x16xf32>
    %170 = arith.mulf %167, %152 : vector<8x16xf32>
    %171 = arith.mulf %166, %168 : vector<8x16xf32>
    %172 = arith.addf %170, %171 : vector<8x16xf32>
    %173 = math.tanh %172 : vector<8x16xf32>
    %174 = arith.mulf %169, %173 : vector<8x16xf32>
    %c0_31 = arith.constant 0 : index
    %c0_32 = arith.constant 0 : index
    %175 = vector.load %arg1[%c0_31, %c0_32] : memref<8x1xf32, #tpu.memory_space<vmem>>, vector<8x1xf32>
    %c0_33 = arith.constant 0 : index
    %c0_34 = arith.constant 0 : index
    %176 = vector.load %arg4[%c0_33, %c0_34] : memref<18x32xf32, #tpu.memory_space<vmem>>, vector<16x32xf32>
    %cst_35 = arith.constant dense<0.000000e+00> : vector<8x32xf32>
    %177 = tpu.matmul %174, %176, %cst_35 {dimension_numbers = #tpu.dot_dimension_numbers<[1], [0], [0], [1], [0, 0, 1, 1], [], []>} : vector<8x16xf32>, vector<16x32xf32>, vector<8x32xf32> -> vector<8x32xf32>
    %c16 = arith.constant 16 : index
    %c0_36 = arith.constant 0 : index
    %178 = vector.load %arg4[%c16, %c0_36] : memref<18x32xf32, #tpu.memory_space<vmem>>, vector<1x32xf32>
    %cst_37 = arith.constant dense<0.000000e+00> : vector<8x32xf32>
    %179 = tpu.matmul %175, %178, %cst_37 {dimension_numbers = #tpu.dot_dimension_numbers<[1], [0], [0], [1], [0, 0, 1, 1], [], []>} : vector<8x1xf32>, vector<1x32xf32>, vector<8x32xf32> -> vector<8x32xf32>
    %180 = arith.addf %177, %179 : vector<8x32xf32>
    %c17 = arith.constant 17 : index
    %c0_38 = arith.constant 0 : index
    %181 = vector.load %arg4[%c17, %c0_38] : memref<18x32xf32, #tpu.memory_space<vmem>>, vector<1x32xf32>
    %182 = vector.broadcast %181 : vector<1x32xf32> to vector<8x32xf32>
    %183 = arith.addf %180, %182 : vector<8x32xf32>
    %cst_39 = arith.constant 0.000000e+00 : f32
    %184 = vector.broadcast %cst_39 : f32 to vector<8x32xf32>
    %185 = arith.maximumf %183, %184 : vector<8x32xf32>
    %c0_40 = arith.constant 0 : index
    %c0_41 = arith.constant 0 : index
    %186 = vector.load %arg5[%c0_40, %c0_41] : memref<33x3xf32, #tpu.memory_space<vmem>>, vector<32x3xf32>
    %cst_42 = arith.constant dense<0.000000e+00> : vector<8x3xf32>
    %187 = tpu.matmul %185, %186, %cst_42 {dimension_numbers = #tpu.dot_dimension_numbers<[1], [0], [0], [1], [0, 0, 1, 1], [], []>} : vector<8x32xf32>, vector<32x3xf32>, vector<8x3xf32> -> vector<8x3xf32>
    %c32 = arith.constant 32 : index
    %c0_43 = arith.constant 0 : index
    %188 = vector.load %arg5[%c32, %c0_43] : memref<33x3xf32, #tpu.memory_space<vmem>>, vector<1x3xf32>
    %189 = vector.broadcast %188 : vector<1x3xf32> to vector<8x3xf32>
    %190 = arith.addf %187, %189 : vector<8x3xf32>
    %191 = vector.extract_strided_slice %190 {offsets = [0, 0], sizes = [8, 1], strides = [1, 1]} : vector<8x3xf32> to vector<8x1xf32>
    %192 = vector.extract_strided_slice %190 {offsets = [0, 1], sizes = [8, 1], strides = [1, 1]} : vector<8x3xf32> to vector<8x1xf32>
    %193 = math.tanh %192 : vector<8x1xf32>
    %194 = vector.extract_strided_slice %190 {offsets = [0, 2], sizes = [8, 1], strides = [1, 1]} : vector<8x3xf32> to vector<8x1xf32>
    %cst_44 = arith.constant 9.99999974E-6 : f32
    %195 = vector.broadcast %cst_44 : f32 to vector<8x1xf32>
    %196 = arith.addf %194, %195 : vector<8x1xf32>
    %cst_45 = arith.constant 0.000000e+00 : f32
    %197 = vector.broadcast %cst_45 : f32 to vector<8x1xf32>
    %198 = arith.maximumf %196, %197 : vector<8x1xf32>
    %199 = math.absf %196 : vector<8x1xf32>
    %cst_46 = arith.constant 0.000000e+00 : f32
    %200 = vector.broadcast %cst_46 : f32 to vector<8x1xf32>
    %201 = arith.subf %200, %199 : vector<8x1xf32>
    %202 = math.exp %201 : vector<8x1xf32>
    %cst_47 = arith.constant 1.000000e+00 : f32
    %203 = vector.broadcast %cst_47 : f32 to vector<8x1xf32>
    %204 = arith.addf %203, %202 : vector<8x1xf32>
    %205 = math.log %204 : vector<8x1xf32>
    %206 = arith.addf %198, %205 : vector<8x1xf32>
    %c0_48 = arith.constant 0 : index
    %207 = memref.load %arg2[%c0_48] : memref<1xf32, #tpu.memory_space<smem>>
    %208 = vector.broadcast %207 : f32 to vector<8x1xf32>
    %209 = arith.mulf %206, %208 : vector<8x1xf32>
    %210 = arith.addf %193, %209 : vector<8x1xf32>
    %cst_49 = arith.constant -1.000000e+00 : f32
    %cst_50 = arith.constant 1.000000e+00 : f32
    %211 = vector.broadcast %cst_49 : f32 to vector<8x1xf32>
    %212 = arith.maximumf %211, %210 : vector<8x1xf32>
    %213 = vector.broadcast %cst_50 : f32 to vector<8x1xf32>
    %214 = arith.minimumf %213, %212 : vector<8x1xf32>
    %215 = tpu.concatenate %191, %193, %206, %214 in 1 : vector<8x1xf32>, vector<8x1xf32>, vector<8x1xf32>, vector<8x1xf32> -> vector<8x4xf32>
    %c0_51 = arith.constant 0 : index
    %c0_52 = arith.constant 0 : index
    %216 = vector.load %arg6[%c0_51, %c0_52] : memref<8x4xf32, #tpu.memory_space<vmem>>, vector<8x4xf32>
    tpu.vector_store %arg6[%c0_51, %c0_52], %215 {strides = array<i32>} : memref<8x4xf32, #tpu.memory_space<vmem>>, vector<8x4xf32>,
    return
  }
}

</mosaic_0001>

<bundles_post_ra>
// kernel: critic_forward.1
= control target key start
LH: loop header
LB: loop body
LE: loop exit
PB: predicated region body
PF: predicated region fallthrough
CT: control target
= control target key end

     0   :  { %v617_v2 = vmov 0.0   ;;  %v26_v3 = vlaneseq  ;;  %v618_v6 = vmov 0.5   ;;  %s619_s26 = smov 96   ;;  %s620_s27 = smov 16   ;;  %vm34_vm3 = vcmask 130048   ;;  %s796_s3 = inlined_call_operand.vmem [shape: f32[16,64], index: 3, kind: input, shape index: {}]   ;;  %s797_s0 = inlined_call_operand.vmem [shape: f32[8,8,64], index: 0, kind: input, shape index: {}]   ;;  %s798_s4 = inlined_call_operand.vmem [shape: f32[18,32], index: 4, kind: input, shape index: {}]   ;;  %s799_s5 = inlined_call_operand.vmem [shape: f32[33,3], index: 5, kind: input, shape index: {}]   ;;  %s800_s1 = inlined_call_operand.vmem [shape: f32[8,1], index: 1, kind: input, shape index: {}]   ;;  %s801_s2 = inlined_call_operand.<no memory space> [shape: f32[1], index: 2, kind: input, shape index: {}]   ;;  %s802_s6 = inlined_call_operand.vmem [shape: f32[8,4], index: 6, kind: output, shape index: {}]  }
   0x1   :  { %v25_v0 = vld [vmem:[%s796_s3 + $0x8] sm:$0xff]  ;;  %v24_v1 = vld [vmem:[%s796_s3] sm:$0xff]  ;;  %s621_s28 = smov 32   ;;  %s622_s29 = smov 80   ;;  %v552_v40 = vld [vmem:[%s797_s0 + $0x10] sm:$0xff]  ;;  %vm431_vm4 = vcmask 1040384  }
   0x2   :  { %52 = vmatpush.msra.mxu0 %v25_v0  ;;  %101 = vmatpush.msra.mxu1 %v25_v0  ;;  %v27_v4 = vand.u32 127, %v26_v3  ;;  %v33_v5 = vld [vmem:[%s797_s0] sm:$0xff]  ;;  %v550_v24 = vld [vmem:[%s797_s0 + $0x8] sm:$0xff]  ;;  %v554_v56 = vld [vmem:[%s797_s0 + $0x18] sm:$0xff]  ;;  %vm427_vm5 = vcmask 7168   ;;  %vm490_vm6 = vcmask 261120  }
   0x3   :  { %150 = vmatpush.msra.mxu2 %v25_v0  ;;  %199 = vmatpush.msra.mxu3 %v25_v0  ;;  %vm540_vm7 = vcmask 15360   ;;  %s624_s14 = smov 2   ;;  %vm542_vm8 = vcmask 23552   ;;  %vm544_vm9 = vcmask 31744  }
   0x4   :  { %53 = vmatpush.msra.mxu0 %v24_v1  ;;  %102 = vmatpush.msra.mxu1 %v24_v1  ;;  %vm28_vm0 = vcmp.ge.s32.totalorder %v27_v4, 32  ;;  %vm29_vm1 = vcmp.lt.s32.totalorder %v27_v4, 48 }
   0x5   :  { %54 = vmatmul.f32.vlgmr.msra.gmra.mxu0 %v617_v2  ;;  %151 = vmatpush.msra.mxu2 %v24_v1  ;;  %vm30_vm2 = vmand %vm28_vm0, %vm29_vm1 }
   0x6   :  { %200 = vmatpush.msra.mxu3 %v24_v1  ;;  %248 = vmatpush.msrb.mxu0 %v25_v0  ;;  %v669_v7 = vsel %vm30_vm2, 1.0, %v618_v6  ;;  %v672_v12 = vsel %vm30_vm2, 0.0, %v618_v6 }
   0x7   :  { %297 = vmatpush.msrb.mxu1 %v25_v0  ;;  %346 = vmatpush.msrb.mxu2 %v25_v0 }
   0x8   :  { %249 = vmatpush.msrb.mxu0 %v24_v1  ;;  %395 = vmatpush.msrb.mxu3 %v25_v0 }
   0x9   :  { %298 = vmatpush.msrb.mxu1 %v24_v1  ;;  %347 = vmatpush.msrb.mxu2 %v24_v1 }
   0xa   :  { %396 = vmatpush.msrb.mxu3 %v24_v1 }
  0x82   :  { %v55_v8 = vpop.f32.mrf.mxu0 }
  0x83   :  { %v58_v9 = vadd.f32 %v55_v8, %v33_v5 }
  0x85   :  { %v59_v10 = vmul.f32 %v58_v9, %v669_v7  ;;  %v556_v9 = vld [vmem:[%s797_s0 + $0x20] sm:$0xff] }
  0x87   :  { %579 = vtanh.f32 %v59_v10 }
  0x8d   :  { %v580_v11 = vpop.eup %579 }
  0x8e   :  { %v61_v13 = vmul.f32 %v580_v11, %v669_v7 }
  0x90   :  { %v62_v14 = vadd.f32 %v61_v13, %v672_v12 }
  0x92   :  { %65 = vrot.lane.b32.xlu0 %v62_v14, %s619_s26  ;;  %v63_v17 = vmul.f32 0.0, %v62_v14 }
 0x104   :  { %v66_v15 = vpop.permute.xlu0 %65 }
 0x105   :  { %v68_v16 = vmul.f32 %v66_v15, %v62_v14 }
 0x107   :  { %70 = vrot.lane.b32.xlu0 %v68_v16, %s620_s27 }
 0x179   :  { %v71_v18 = vpop.permute.xlu0 %70 }
 0x17a   :  { %v73_v19 = vadd.f32 %v71_v18, %v63_v17 }
 0x17c   :  { %581 = vtanh.f32 %v73_v19 }
 0x182   :  { %v582_v20 = vpop.eup %581 }
 0x183   :  { %76 = vrot.lane.b32.xlu1 %v582_v20, %s621_s28 }
 0x1f5   :  { %v77_v21 = vpop.permute.xlu1 %76 }
 0x1f6   :  { %v79_v22 = vmul.f32 %v77_v21, %v62_v14 }
 0x1f8   :  { %83 = vrot.lane.b32.xlu1 %v79_v22, %s622_s29 }
 0x26a   :  { %v84_v23 = vpop.permute.xlu1 %83 }
 0x26b   :  { %551 = vmatmul.msk.f32.vlgmr.msra.gmra.mxu1 %vm34_vm3, %v84_v23 }
 0x2e8   :  { %v104_v25 = vpop.f32.mrf.mxu1 }
 0x2e9   :  { %v107_v26 = vadd.f32 %v550_v24, %v104_v25 }
 0x2eb   :  { %v108_v27 = vmul.f32 %v107_v26, %v669_v7  ;;  %v558_v26 = vld [vmem:[%s797_s0 + $0x28] sm:$0xff] }
 0x2ed   :  { %583 = vtanh.f32 %v108_v27 }
 0x2f3   :  { %v584_v28 = vpop.eup %583 }
 0x2f4   :  { %v110_v29 = vmul.f32 %v584_v28, %v669_v7 }
 0x2f6   :  { %v111_v30 = vadd.f32 %v110_v29, %v672_v12 }
 0x2f8   :  { %114 = vrot.lane.b32.xlu2 %v111_v30, %s619_s26  ;;  %v112_v33 = vmul.f32 %v111_v30, %v73_v19 }
 0x352   :  { %v115_v31 = vpop.permute.xlu2 %114 }
 0x353   :  { %v117_v32 = vmul.f32 %v115_v31, %v111_v30 }
 0x355   :  { %119 = vrot.lane.b32.xlu2 %v117_v32, %s620_s27 }
 0x3af   :  { %v120_v34 = vpop.permute.xlu2 %119 }
 0x3b0   :  { %v122_v35 = vadd.f32 %v120_v34, %v112_v33 }
 0x3b2   :  { %585 = vtanh.f32 %v122_v35 }
 0x3b8   :  { %v586_v36 = vpop.eup %585 }
 0x3b9   :  { %125 = vrot.lane.b32.xlu0 %v586_v36, %s621_s28 }
 0x42b   :  { %v126_v37 = vpop.permute.xlu0 %125 }
 0x42c   :  { %v128_v38 = vmul.f32 %v126_v37, %v111_v30 }
 0x42e   :  { %132 = vrot.lane.b32.xlu1 %v128_v38, %s622_s29 }
 0x4a0   :  { %v133_v39 = vpop.permute.xlu1 %132 }
 0x4a1   :  { %553 = vmatmul.msk.f32.vlgmr.msra.gmra.mxu2 %vm34_vm3, %v133_v39 }
 0x524   :  { %v153_v41 = vpop.f32.mrf.mxu2 }
 0x525   :  { %v156_v42 = vadd.f32 %v552_v40, %v153_v41 }
 0x527   :  { %v157_v43 = vmul.f32 %v156_v42, %v669_v7  ;;  %v560_v42 = vld [vmem:[%s797_s0 + $0x30] sm:$0xff] }
 0x529   :  { %587 = vtanh.f32 %v157_v43 }
 0x52f   :  { %v588_v44 = vpop.eup %587 }
 0x530   :  { %v159_v45 = vmul.f32 %v588_v44, %v669_v7 }
 0x532   :  { %v160_v46 = vadd.f32 %v159_v45, %v672_v12 }
 0x534   :  { %163 = vrot.lane.b32.xlu2 %v160_v46, %s619_s26  ;;  %v161_v49 = vmul.f32 %v160_v46, %v122_v35 }
 0x58e   :  { %v164_v47 = vpop.permute.xlu2 %163 }
 0x58f   :  { %v166_v48 = vmul.f32 %v164_v47, %v160_v46 }
 0x591   :  { %168 = vrot.lane.b32.xlu0 %v166_v48, %s620_s27 }
 0x603   :  { %v169_v50 = vpop.permute.xlu0 %168 }
 0x604   :  { %v171_v51 = vadd.f32 %v169_v50, %v161_v49 }
 0x606   :  { %589 = vtanh.f32 %v171_v51 }
 0x60c   :  { %v590_v52 = vpop.eup %589 }
 0x60d   :  { %174 = vrot.lane.b32.xlu1 %v590_v52, %s621_s28 }
 0x67f   :  { %v175_v53 = vpop.permute.xlu1 %174 }
 0x680   :  { %v177_v54 = vmul.f32 %v175_v53, %v160_v46 }
 0x682   :  { %181 = vrot.lane.b32.xlu2 %v177_v54, %s622_s29 }
 0x6dc   :  { %v182_v55 = vpop.permute.xlu2 %181 }
 0x6dd   :  { %555 = vmatmul.msk.f32.vlgmr.msra.gmra.mxu3 %vm34_vm3, %v182_v55 }
 0x760   :  { %v202_v57 = vpop.f32.mrf.mxu3 }
 0x761   :  { %v205_v58 = vadd.f32 %v554_v56, %v202_v57 }
 0x763   :  { %v206_v59 = vmul.f32 %v205_v58, %v669_v7  ;;  %v562_v58 = vld [vmem:[%s797_s0 + $0x38] sm:$0xff] }
 0x765   :  { %591 = vtanh.f32 %v206_v59 }
 0x76b   :  { %v592_v60 = vpop.eup %591 }
 0x76c   :  { %v208_v61 = vmul.f32 %v592_v60, %v669_v7 }
 0x76e   :  { %v209_v62 = vadd.f32 %v208_v61, %v672_v12 }
 0x770   :  { %212 = vrot.lane.b32.xlu0 %v209_v62, %s619_s26  ;;  %v210_v1 = vmul.f32 %v209_v62, %v171_v51 }
 0x7e2   :  { %v213_v63 = vpop.permute.xlu0 %212 }
 0x7e3   :  { %v215_v0 = vmul.f32 %v213_v63, %v209_v62 }
 0x7e5   :  { %217 = vrot.lane.b32.xlu1 %v215_v0, %s620_s27 }
 0x857   :  { %v218_v2 = vpop.permute.xlu1 %217 }
 0x858   :  { %v220_v3 = vadd.f32 %v218_v2, %v210_v1 }
 0x85a   :  { %593 = vtanh.f32 %v220_v3 }
 0x860   :  { %v594_v4 = vpop.eup %593 }
 0x861   :  { %223 = vrot.lane.b32.xlu2 %v594_v4, %s621_s28 }
 0x8bb   :  { %v224_v5 = vpop.permute.xlu2 %223 }
 0x8bc   :  { %v226_v6 = vmul.f32 %v224_v5, %v209_v62 }
 0x8be   :  { %230 = vrot.lane.b32.xlu0 %v226_v6, %s622_s29 }
 0x930   :  { %v231_v8 = vpop.permute.xlu0 %230 }
 0x931   :  { %557 = vmatmul.msk.f32.vlgmr.msrb.gmra.mxu0 %vm34_vm3, %v231_v8  ;;  %v426_v8 = vld [vmem:[%s798_s4 + $0x10] sm:$0x1] }
 0x932   :  { %564 = vmatpush.msk.msra.mxu0 %vm431_vm4, %v426_v8 }
 0x9ae   :  { %v251_v10 = vpop.f32.mrf.mxu0 }
 0x9af   :  { %v254_v11 = vadd.f32 %v556_v9, %v251_v10 }
 0x9b1   :  { %v255_v13 = vmul.f32 %v254_v11, %v669_v7  ;;  %v423_v11 = vld [vmem:[%s800_s1] sm:$0xff] }
 0x9b2   :  { %565 = vmatmul.msk.f32.vlgmr.msra.gmra.mxu0 %vm427_vm5, %v423_v11 }
 0x9b3   :  { %595 = vtanh.f32 %v255_v13  ;;  %v487_v13 = vld [vmem:[%s799_s5 + $0x18] sm:$0xff] }
 0x9b4   :  { %506 = vmatpush.msra.mxu2 %v487_v13 }
 0x9b9   :  { %v596_v14 = vpop.eup %595 }
 0x9ba   :  { %v257_v15 = vmul.f32 %v596_v14, %v669_v7 }
 0x9bc   :  { %v258_v16 = vadd.f32 %v257_v15, %v672_v12  ;;  %v486_v15 = vld [vmem:[%s799_s5 + $0x10] sm:$0xff] }
 0x9bd   :  { %507 = vmatpush.msra.mxu2 %v486_v15 }
 0x9be   :  { %261 = vrot.lane.b32.xlu1 %v258_v16, %s619_s26  ;;  %v259_v19 = vmul.f32 %v258_v16, %v220_v3 }
 0xa30   :  { %v262_v17 = vpop.permute.xlu1 %261 }
 0xa31   :  { %v264_v18 = vmul.f32 %v262_v17, %v258_v16  ;;  %v484_v17 = vld [vmem:[%s799_s5] sm:$0xff] }
 0xa33   :  { %266 = vrot.lane.b32.xlu2 %v264_v18, %s620_s27  ;;  %v452_v18 = vpop.f32.mrf.mxu0 }
 0xa8d   :  { %v267_v20 = vpop.permute.xlu2 %266 }
 0xa8e   :  { %v269_v21 = vadd.f32 %v267_v20, %v259_v19  ;;  %v577_v19 = vld [vmem:[%s798_s4 + $0x11] ss:$0 sm:$0xff] }
 0xa90   :  { %597 = vtanh.f32 %v269_v21 }
 0xa96   :  { %v598_v22 = vpop.eup %597 }
 0xa97   :  { %272 = vrot.lane.b32.xlu0 %v598_v22, %s621_s28 }
 0xb09   :  { %v273_v23 = vpop.permute.xlu0 %272 }
 0xb0a   :  { %v275_v24 = vmul.f32 %v273_v23, %v258_v16  ;;  %v485_v16 = vld [vmem:[%s799_s5 + $0x8] sm:$0xff] }
 0xb0b   :  { %508 = vmatpush.msra.mxu2 %v485_v16 }
 0xb0c   :  { %279 = vrot.lane.b32.xlu1 %v275_v24, %s622_s29  ;;  %v578_v24 = vld [vmem:[%s799_s5 + $0x20] ss:$0 sm:$0xff]  ;;  %s623_s5 = smov 127  }
 0xb0d   :  { %509 = vmatpush.msra.mxu2 %v484_v17 }
 0xb7e   :  { %v280_v25 = vpop.permute.xlu1 %279 }
 0xb7f   :  { %559 = vmatmul.msk.f32.vlgmr.msrb.gmra.mxu1 %vm34_vm3, %v280_v25 }
 0xbfc   :  { %v300_v27 = vpop.f32.mrf.mxu1 }
 0xbfd   :  { %v303_v28 = vadd.f32 %v558_v26, %v300_v27 }
 0xbff   :  { %v304_v29 = vmul.f32 %v303_v28, %v669_v7 }
 0xc01   :  { %599 = vtanh.f32 %v304_v29 }
 0xc07   :  { %v600_v30 = vpop.eup %599 }
 0xc08   :  { %v306_v31 = vmul.f32 %v600_v30, %v669_v7 }
 0xc0a   :  { %v307_v32 = vadd.f32 %v306_v31, %v672_v12 }
 0xc0c   :  { %310 = vrot.lane.b32.xlu2 %v307_v32, %s619_s26  ;;  %v308_v35 = vmul.f32 %v307_v32, %v269_v21 }
 0xc66   :  { %v311_v33 = vpop.permute.xlu2 %310 }
 0xc67   :  { %v313_v34 = vmul.f32 %v311_v33, %v307_v32 }
 0xc69   :  { %315 = vrot.lane.b32.xlu0 %v313_v34, %s620_s27 }
 0xcdb   :  { %v316_v36 = vpop.permute.xlu0 %315 }
 0xcdc   :  { %v318_v37 = vadd.f32 %v316_v36, %v308_v35 }
 0xcde   :  { %601 = vtanh.f32 %v318_v37 }
 0xce4   :  { %v602_v38 = vpop.eup %601 }
 0xce5   :  { %321 = vrot.lane.b32.xlu1 %v602_v38, %s621_s28 }
 0xd57   :  { %v322_v39 = vpop.permute.xlu1 %321 }
 0xd58   :  { %v324_v40 = vmul.f32 %v322_v39, %v307_v32 }
 0xd5a   :  { %328 = vrot.lane.b32.xlu2 %v324_v40, %s622_s29 }
 0xdb4   :  { %v329_v41 = vpop.permute.xlu2 %328 }
 0xdb5   :  { %561 = vmatmul.msk.f32.vlgmr.msrb.gmra.mxu2 %vm34_vm3, %v329_v41 }
 0xe38   :  { %v349_v43 = vpop.f32.mrf.mxu2 }
 0xe39   :  { %v352_v44 = vadd.f32 %v560_v42, %v349_v43 }
 0xe3b   :  { %v353_v45 = vmul.f32 %v352_v44, %v669_v7 }
 0xe3d   :  { %603 = vtanh.f32 %v353_v45 }
 0xe43   :  { %v604_v46 = vpop.eup %603 }
 0xe44   :  { %v355_v47 = vmul.f32 %v604_v46, %v669_v7 }
 0xe46   :  { %v356_v48 = vadd.f32 %v355_v47, %v672_v12 }
 0xe48   :  { %359 = vrot.lane.b32.xlu0 %v356_v48, %s619_s26  ;;  %v357_v51 = vmul.f32 %v356_v48, %v318_v37  ;;  %v526_v37 = vstv %s801_s2 }
 0xeba   :  { %v360_v49 = vpop.permute.xlu0 %359 }
 0xebb   :  { %v362_v50 = vmul.f32 %v360_v49, %v356_v48 }
 0xebd   :  { %364 = vrot.lane.b32.xlu1 %v362_v50, %s620_s27 }
 0xf2f   :  { %v365_v52 = vpop.permute.xlu1 %364 }
 0xf30   :  { %v367_v53 = vadd.f32 %v365_v52, %v357_v51 }
 0xf32   :  { %605 = vtanh.f32 %v367_v53 }
 0xf38   :  { %v606_v54 = vpop.eup %605 }
 0xf39   :  { %370 = vrot.lane.b32.xlu2 %v606_v54, %s621_s28 }
 0xf93   :  { %v371_v55 = vpop.permute.xlu2 %370 }
 0xf94   :  { %v373_v56 = vmul.f32 %v371_v55, %v356_v48 }
 0xf96   :  { %377 = vrot.lane.b32.xlu0 %v373_v56, %s622_s29 }
0x1008   :  { %v378_v57 = vpop.permute.xlu0 %377 }
0x1009   :  { %563 = vmatmul.msk.f32.vlgmr.msrb.gmra.mxu3 %vm34_vm3, %v378_v57 }
0x108c   :  { %v398_v59 = vpop.f32.mrf.mxu3 }
0x108d   :  { %v401_v60 = vadd.f32 %v562_v58, %v398_v59 }
0x108f   :  { %v402_v61 = vmul.f32 %v401_v60, %v669_v7 }
0x1091   :  { %607 = vtanh.f32 %v402_v61 }
0x1097   :  { %v608_v62 = vpop.eup %607 }
0x1098   :  { %v404_v63 = vmul.f32 %v608_v62, %v669_v7  ;;  %v425_v7 = vld [vmem:[%s798_s4 + $0x8] sm:$0xff] }
0x1099   :  { %474 = vmatpush.msra.mxu1 %v425_v7 }
0x109a   :  { %v405_v0 = vadd.f32 %v404_v63, %v672_v12  ;;  %v424_v12 = vld [vmem:[%s798_s4] sm:$0xff] }
0x109b   :  { %475 = vmatpush.msra.mxu1 %v424_v12 }
0x109c   :  { %408 = vrot.lane.b32.xlu1 %v405_v0, %s619_s26  ;;  %v406_v3 = vmul.f32 %v405_v0, %v367_v53 }
0x110e   :  { %v409_v1 = vpop.permute.xlu1 %408 }
0x110f   :  { %v411_v2 = vmul.f32 %v409_v1, %v405_v0 }
0x1111   :  { %413 = vrot.lane.b32.xlu2 %v411_v2, %s620_s27 }
0x116b   :  { %v414_v4 = vpop.permute.xlu2 %413 }
0x116c   :  { %v416_v5 = vadd.f32 %v414_v4, %v406_v3 }
0x116e   :  { %609 = vtanh.f32 %v416_v5 }
0x1174   :  { %v610_v6 = vpop.eup %609 }
0x1175   :  { %419 = vrot.lane.b32.xlu0 %v610_v6, %s621_s28 }
0x11e7   :  { %v420_v9 = vpop.permute.xlu0 %419 }
0x11e8   :  { %v422_v10 = vmul.f32 %v420_v9, %v405_v0 }
0x11ea   :  { %456 = vrot.lane.b32.xlu1 %v422_v10, %s622_s29 }
0x125c   :  { %v457_v14 = vpop.permute.xlu1 %456 }
0x125d   :  { %566 = vmatmul.msk.f32.vlgmr.msra.gmra.mxu1 %vm34_vm3, %v457_v14 }
0x12da   :  { %v477_v20 = vpop.f32.mrf.mxu1 }
0x12db   :  { %v478_v21 = vadd.f32 %v477_v20, %v452_v18 }
0x12dd   :  { %v482_v22 = vadd.f32 %v577_v19, %v478_v21 }
0x12df   :  { %v483_v23 = vmax.f32 %v482_v22, 0.0 }
0x12e1   :  { %567 = vmatmul.msk.f32.vlgmr.msra.gmra.mxu2 %vm490_vm6, %v483_v23 }
0x1364   :  { %v511_v25 = vpop.f32.mrf.mxu2 }
0x1365   :  { %v512_v26 = vadd.f32 %v578_v24, %v511_v25 }
0x1367   :  { %v515_v27 = vadd.f32 1e-05, %v512_v26 }
0x1369   :  { %v517_v28 = vand.u32 2147483647, %v515_v27  ;;  %v516_v35 = vmax.f32 %v515_v27, 0.0 }
0x136b   :  { %v518_v29 = vsub.f32 0.0, %v517_v28 }
0x136d   :  { %v519_v30 = vmul.f32 1.442695, %v518_v29 }
0x136f   :  { %611 = vpow2.f32 %v519_v30 }
0x1375   :  { %v612_v31 = vpop.eup %611 }
0x1376   :  { %v521_v32 = vadd.f32 1.0, %v612_v31 }
0x1378   :  { %613 = vlog2.f32 %v521_v32 }
0x1379   :  { %615 = vtanh.f32 %v512_v26 }
0x137e   :  { %v614_v33 = vpop.eup %613 }
0x137f   :  { %v616_v34 = vpop.eup %615  ;;  %v523_v36 = vmul.f32 0.6931472, %v614_v33 }
0x1380   :  { %v539_v39 = vsel %vm427_vm5, %v512_v26, %v616_v34 }
0x1381   :  { %v524_v38 = vadd.f32 %v523_v36, %v516_v35 }
0x1383   :  { %v527_v40 = vmul.f32 %v526_v37, %v524_v38  ;;  %v541_v41 = vsel %vm540_vm7, %v539_v39, %v524_v38 }
0x1385   :  { %529 = vrot.lane.b32.xlu2 %v527_v40, %s623_s5 }
0x13df   :  { %v530_v42 = vpop.permute.xlu2 %529 }
0x13e0   :  { %v532_v43 = vadd.f32 %v616_v34, %v530_v42 }
0x13e2   :  { %v568_v44 = vclamps-f32 %v532_v43, 1.0 }
0x13e4   :  { %536 = vrot.lane.b32.xlu0 %v568_v44, %s624_s14 }
0x1456   :  { %v537_v45 = vpop.permute.xlu0 %536 }
0x1457   :  { %v543_v46 = vsel %vm542_vm8, %v541_v41, %v537_v45 }
0x1458   :  { %545 = vst.msk [vmem:[%s802_s6] sm:$0xff] %vm544_vm9, %v543_v46 }

</bundles_post_ra>
